<compile_context>
chip_gen: v7x
topology: tpu7x:2x2x1
jax: 0.10.0
libtpu: 0.0.40
codegen_flags: <defaults>
</compile_context>

<pallas_src>
import functools
import math

import jax
import jax.numpy as jnp
from jax.experimental import pallas as pl
from jax.experimental.pallas import tpu as pltpu

H1, H2, H3 = 256, 128, 1
_LANE = 128


def _gelu(x, approximate):
    if approximate:
        # tanh approximation -> transcendental goes to the EUP slot (off the VALU
        # critical path); useful in the small-dim / compute-bound regime.
        c = math.sqrt(2.0 / math.pi)
        return 0.5 * x * (1.0 + jnp.tanh(c * (x + 0.044715 * x * x * x)))
    # PyTorch nn.GELU() default: exact erf-based GELU.
    return 0.5 * x * (1.0 + jax.lax.erf(x * (1.0 / math.sqrt(2.0))))


def _mlp_kernel(x_ref, w1_ref, b1_ref, w2_ref, b2_ref, w3_ref, b3_ref, o_ref,
                *, approximate_gelu):
    # Layer 1: (TB, dim) @ (dim, 256) -- bf16 MXU inputs, f32 accumulation.
    # astype is a no-op if the caller already streams bf16 activations.
    x = x_ref[...].astype(jnp.bfloat16)
    h1 = jnp.dot(x, w1_ref[...], preferred_element_type=jnp.float32)
    h1 = _gelu(h1 + b1_ref[...], approximate_gelu)        # dropout = identity (eval)

    # Layer 2: (TB, 256) @ (256, 128)
    h2 = jnp.dot(h1.astype(jnp.bfloat16), w2_ref[...],
                 preferred_element_type=jnp.float32)
    h2 = _gelu(h2 + b2_ref[...], approximate_gelu)        # dropout = identity (eval)

    # Layer 3 (128 -> 1): VPU multiply + lane reduction instead of an N=1 MXU matmul.
    out = jnp.sum(h2 * w3_ref[...], axis=-1, keepdims=True) + b3_ref[...]   # (TB, 1)
    o_ref[...] = out.astype(o_ref.dtype)


def _round_up(x, m):
    return ((x + m - 1) // m) * m


def _vmem_capacity_bytes():
    """Physical VMEM per TensorCore (64 MiB on v7x, 128 MiB on v5e/v6e)."""
    try:
        cap = int(pltpu.get_tpu_info().vmem_capacity_bytes)
        if cap > 0:
            return cap
    except Exception:
        pass
    return 128 << 20


def _per_row_vmem_bytes(dim, x_itemsize, n_x_buffers):
    # pipelined x buffers + in-kernel bf16 copy of the x tile
    # + f32 h1/h2 intermediates (x2 slack for GELU temporaries) + misc.
    return n_x_buffers * dim * x_itemsize + dim * 2 + (H1 + H2) * 4 * 2 + 16


def _resident_vmem_bytes(dim):
    # bf16 w1/w2 + biases/w3 row + 1 MiB slack for compiler scratch.
    return dim * H1 * 2 + H1 * H2 * 2 + (1 << 20)


def _choose_block_b(batch, dim, x_itemsize, n_x_buffers, vmem_cap):
    """Dim- and generation-aware batch tile (multiple of 128 MXU-M rows)."""
    small_vmem = vmem_cap < (100 << 20)              # v7x-class (64 MiB/TC)
    # Faster HBM (v7x ~3.2 TB/s) needs a bigger per-step DMA to keep the fixed
    # ~0.35 us per-step overhead small; v5e/v6e are fine around 4 MiB.
    target_tile_bytes = (8 << 20) if small_vmem else (4 << 20)
    budget = int(vmem_cap * 0.75)                    # headroom for the compiler

    per_row = _per_row_vmem_bytes(dim, x_itemsize, n_x_buffers)
    resident = _resident_vmem_bytes(dim)

    tb_target = max(1, target_tile_bytes // max(1, dim * x_itemsize))
    tb_vmem = max(1, (budget - resident) // per_row)
    tb = max(_LANE, _round_up(min(tb_target, tb_vmem), _LANE))
    # No point tiling past the (lane-rounded) batch.
    tb = min(tb, max(_LANE, _round_up(batch, _LANE)))
    return tb


def _vmem_limit_bytes(tb, dim, x_itemsize, n_x_buffers, vmem_cap):
    est = tb * _per_row_vmem_bytes(dim, x_itemsize, n_x_buffers) + _resident_vmem_bytes(dim)
    return int(min(vmem_cap * 0.8, max(32 << 20, 2 * est)))


def multimodalnet_forward(x, params, *, block_b=None, approximate_gelu=False,
                          x_buffers=2, dimension_semantics=None):
    w1, b1, w2, b2, w3, b3 = params
    B, dim = x.shape

    vmem_cap = _vmem_capacity_bytes()
    if block_b is None:
        block_b = _choose_block_b(B, dim, x.dtype.itemsize, x_buffers, vmem_cap)
    vmem_limit = _vmem_limit_bytes(block_b, dim, x.dtype.itemsize, x_buffers, vmem_cap)

    grid = (pl.cdiv(B, block_b),)                    # no jnp.pad: edge block is masked

    flops = 2 * B * (dim * H1 + H1 * H2 + H2 * H3)
    bytes_accessed = (
        int(x.size) * x.dtype.itemsize
        + sum(int(p.size) * p.dtype.itemsize for p in params)
        + B * H3 * 4
    )

    # Streamed activations: one (TB, dim) tile per grid step (optionally >2 buffers).
    x_spec_kwargs = {}
    if x_buffers is not None and x_buffers != 2:
        x_spec_kwargs["pipeline_mode"] = pl.Buffered(x_buffers)
    x_spec = pl.BlockSpec((block_b, dim), lambda i: (i, 0), **x_spec_kwargs)

    if dimension_semantics is None:
        dimension_semantics = ("parallel",)

    kernel = functools.partial(_mlp_kernel, approximate_gelu=approximate_gelu)

    out = pl.pallas_call(
        kernel,
        out_shape=jax.ShapeDtypeStruct((B, H3), jnp.float32),
        grid_spec=pltpu.PrefetchScalarGridSpec(
            num_scalar_prefetch=0,
            grid=grid,
            in_specs=[
                x_spec,
                # Weights / biases: constant block index -> loaded once, VMEM-resident.
                pl.BlockSpec((dim, H1), lambda i: (0, 0)),
                pl.BlockSpec((1, H1), lambda i: (0, 0)),
                pl.BlockSpec((H1, H2), lambda i: (0, 0)),
                pl.BlockSpec((1, H2), lambda i: (0, 0)),
                pl.BlockSpec((1, H2), lambda i: (0, 0)),   # w3 as a (1, 128) row
                pl.BlockSpec((1, 1), lambda i: (0, 0)),    # b3 scalar
            ],
            out_specs=pl.BlockSpec((block_b, H3), lambda i: (i, 0)),
        ),
        compiler_params=pltpu.CompilerParams(
            dimension_semantics=dimension_semantics,
            vmem_limit_bytes=vmem_limit,
        ),
        cost_estimate=pl.CostEstimate(
            flops=flops,
            transcendentals=B * (H1 + H2),   # one erf/tanh per hidden activation
            bytes_accessed=bytes_accessed,
        ),
    )(x, w1, b1, w2, b2, w3, b3)

    return out


def init_params(dim, key):
    """nn.Linear default init: U(-1/sqrt(fan_in), +1/sqrt(fan_in)).

    Layer-1/2 weights stored pre-transposed as (in, out) and in bf16 for the MXU;
    biases stay f32; layer-3 weight is an f32 (1, 128) row used by the VPU reduce.
    """
    ks = jax.random.split(key, 6)

    def linear(kw, kb, fan_in, fan_out):
        bound = 1.0 / math.sqrt(fan_in)
        w = jax.random.uniform(kw, (fan_in, fan_out), jnp.float32, -bound, bound)
        b = jax.random.uniform(kb, (1, fan_out), jnp.float32, -bound, bound)
        return w, b

    w1, b1 = linear(ks[0], ks[1], dim, H1)
    w2, b2 = linear(ks[2], ks[3], H1, H2)
    w3, b3 = linear(ks[4], ks[5], H2, H3)          # w3: (128, 1), b3: (1, 1)
    return (w1.astype(jnp.bfloat16), b1,
            w2.astype(jnp.bfloat16), b2,
            w3.T, b3)                               # w3.T: (1, 128)


def reference_forward(x, params, approximate_gelu=False):
    """Pure-JAX reference mirroring the kernel's numerics (bf16 MXU inputs, f32 accum)."""
    w1, b1, w2, b2, w3, b3 = params
    h1 = _gelu(jnp.dot(x.astype(jnp.bfloat16), w1,
                       preferred_element_type=jnp.float32) + b1, approximate_gelu)
    h2 = _gelu(jnp.dot(h1.astype(jnp.bfloat16), w2,
                       preferred_element_type=jnp.float32) + b2, approximate_gelu)
    return jnp.sum(h2 * w3, axis=-1, keepdims=True) + b3


if __name__ == "__main__":
    key = jax.random.PRNGKey(0)
    k_x, k_p = jax.random.split(key)

    batch, dim = 2, 32
    x = jax.random.normal(k_x, (batch, dim), jnp.float32)
    params = init_params(dim, k_p)

    # batch (2) is not a multiple of the chosen block -> exercises the masked
    # partial edge block introduced by removing the jnp.pad.
    out = multimodalnet_forward(x, params)
    out = jax.block_until_ready(out)

    ref = reference_forward(x, params)
    assert out.shape == (batch, 1), out.shape
    assert jnp.allclose(out, ref, atol=2e-3, rtol=2e-3), (out, ref)

    print("KERNEL_OK")
</pallas_src>

<mosaic_0001>
module attributes {stable_mosaic.version = 11 : i64} {
  func.func @_mlp_kernel(%arg0: i32, %arg1: memref<128x32xf32, #tpu.memory_space<vmem>>, %arg2: memref<32x256xbf16, #tpu.memory_space<vmem>>, %arg3: memref<1x256xf32, #tpu.memory_space<vmem>>, %arg4: memref<256x128xbf16, #tpu.memory_space<vmem>>, %arg5: memref<1x128xf32, #tpu.memory_space<vmem>>, %arg6: memref<1x128xf32, #tpu.memory_space<vmem>>, %arg7: memref<1x1xf32, #tpu.memory_space<vmem>>, %arg8: memref<128x1xf32, #tpu.memory_space<vmem>>) attributes {dimension_semantics = [#tpu.dimension_semantics<parallel>], iteration_bounds = array<i64: 1>, scalar_prefetch = 0 : i64, scratch_operands = 0 : i64, tpu.core_type = #tpu.core_type<tc>, window_params = [{transform_indices = @transform_0, window_bounds = array<i64: 128, 32>}, {pipeline_mode = #tpu.pipeline_mode<synchronous>, transform_indices = @transform_1, window_bounds = array<i64: 32, 256>}, {pipeline_mode = #tpu.pipeline_mode<synchronous>, transform_indices = @transform_2, window_bounds = array<i64: 1, 256>}, {pipeline_mode = #tpu.pipeline_mode<synchronous>, transform_indices = @transform_3, window_bounds = array<i64: 256, 128>}, {pipeline_mode = #tpu.pipeline_mode<synchronous>, transform_indices = @transform_4, window_bounds = array<i64: 1, 128>}, {pipeline_mode = #tpu.pipeline_mode<synchronous>, transform_indices = @transform_5, window_bounds = array<i64: 1, 128>}, {pipeline_mode = #tpu.pipeline_mode<synchronous>, transform_indices = @transform_6, window_bounds = array<i64: 1, 1>}, {transform_indices = @transform_7, window_bounds = array<i64: 128, 1>}]} {
    %c0 = arith.constant 0 : index
    %c0_0 = arith.constant 0 : index
    %0 = vector.load %arg1[%c0, %c0_0] : memref<128x32xf32, #tpu.memory_space<vmem>>, vector<128x32xf32>
    %1 = arith.truncf %0 : vector<128x32xf32> to vector<128x32xbf16>
    %c0_1 = arith.constant 0 : index
    %c0_2 = arith.constant 0 : index
    %2 = vector.load %arg2[%c0_1, %c0_2] : memref<32x256xbf16, #tpu.memory_space<vmem>>, vector<32x256xbf16>
    %cst = arith.constant dense<0.000000e+00> : vector<128x256xf32>
    %3 = tpu.matmul %1, %2, %cst {dimension_numbers = #tpu.dot_dimension_numbers<[1], [0], [0], [1], [0, 0, 1, 1], [], []>} : vector<128x32xbf16>, vector<32x256xbf16>, vector<128x256xf32> -> vector<128x256xf32>
    %c0_3 = arith.constant 0 : index
    %c0_4 = arith.constant 0 : index
    %4 = vector.load %arg3[%c0_3, %c0_4] : memref<1x256xf32, #tpu.memory_space<vmem>>, vector<1x256xf32>
    %5 = vector.broadcast %4 : vector<1x256xf32> to vector<128x256xf32>
    %6 = arith.addf %3, %5 : vector<128x256xf32>
    %cst_5 = arith.constant 5.000000e-01 : f32
    %7 = vector.broadcast %cst_5 : f32 to vector<128x256xf32>
    %8 = arith.mulf %7, %6 : vector<128x256xf32>
    %cst_6 = arith.constant 0.707106769 : f32
    %9 = vector.broadcast %cst_6 : f32 to vector<128x256xf32>
    %10 = arith.mulf %6, %9 : vector<128x256xf32>
    %11 = math.erf %10 : vector<128x256xf32>
    %cst_7 = arith.constant 1.000000e+00 : f32
    %12 = vector.broadcast %cst_7 : f32 to vector<128x256xf32>
    %13 = arith.addf %12, %11 : vector<128x256xf32>
    %14 = arith.mulf %8, %13 : vector<128x256xf32>
    %15 = arith.truncf %14 : vector<128x256xf32> to vector<128x256xbf16>
    %c0_8 = arith.constant 0 : index
    %c0_9 = arith.constant 0 : index
    %16 = vector.load %arg4[%c0_8, %c0_9] : memref<256x128xbf16, #tpu.memory_space<vmem>>, vector<256x128xbf16>
    %cst_10 = arith.constant dense<0.000000e+00> : vector<128x128xf32>
    %17 = tpu.matmul %15, %16, %cst_10 {dimension_numbers = #tpu.dot_dimension_numbers<[1], [0], [0], [1], [0, 0, 1, 1], [], []>} : vector<128x256xbf16>, vector<256x128xbf16>, vector<128x128xf32> -> vector<128x128xf32>
    %c0_11 = arith.constant 0 : index
    %c0_12 = arith.constant 0 : index
    %18 = vector.load %arg5[%c0_11, %c0_12] : memref<1x128xf32, #tpu.memory_space<vmem>>, vector<1x128xf32>
    %19 = vector.broadcast %18 : vector<1x128xf32> to vector<128x128xf32>
    %20 = arith.addf %17, %19 : vector<128x128xf32>
    %cst_13 = arith.constant 5.000000e-01 : f32
    %21 = vector.broadcast %cst_13 : f32 to vector<128x128xf32>
    %22 = arith.mulf %21, %20 : vector<128x128xf32>
    %cst_14 = arith.constant 0.707106769 : f32
    %23 = vector.broadcast %cst_14 : f32 to vector<128x128xf32>
    %24 = arith.mulf %20, %23 : vector<128x128xf32>
    %25 = math.erf %24 : vector<128x128xf32>
    %cst_15 = arith.constant 1.000000e+00 : f32
    %26 = vector.broadcast %cst_15 : f32 to vector<128x128xf32>
    %27 = arith.addf %26, %25 : vector<128x128xf32>
    %28 = arith.mulf %22, %27 : vector<128x128xf32>
    %c0_16 = arith.constant 0 : index
    %c0_17 = arith.constant 0 : index
    %29 = vector.load %arg6[%c0_16, %c0_17] : memref<1x128xf32, #tpu.memory_space<vmem>>, vector<1x128xf32>
    %30 = vector.broadcast %29 : vector<1x128xf32> to vector<128x128xf32>
    %31 = arith.mulf %28, %30 : vector<128x128xf32>
    %cst_18 = arith.constant dense<0.000000e+00> : vector<128xf32>
    %32 = vector.multi_reduction <add>, %31, %cst_18 [1] : vector<128x128xf32> to vector<128xf32>
    %33 = vector.shape_cast %32 : vector<128xf32> to vector<128x1xf32>
    %c0_19 = arith.constant 0 : index
    %c0_20 = arith.constant 0 : index
    %34 = vector.load %arg7[%c0_19, %c0_20] : memref<1x1xf32, #tpu.memory_space<vmem>>, vector<1x1xf32>
    %35 = vector.broadcast %34 : vector<1x1xf32> to vector<128x1xf32>
    %36 = arith.addf %33, %35 : vector<128x1xf32>
    %c0_21 = arith.constant 0 : index
    %c0_22 = arith.constant 0 : index
    %37 = vector.load %arg8[%c0_21, %c0_22] : memref<128x1xf32, #tpu.memory_space<vmem>>, vector<128x1xf32>
    tpu.vector_store %arg8[%c0_21, %c0_22], %36 {strides = array<i32>} : memref<128x1xf32, #tpu.memory_space<vmem>>, vector<128x1xf32>,
    return
  }
  func.func @transform_0(%arg0: i32) -> (i32, i32) {
    %c0_i32 = arith.constant 0 : i32
    %c0_i32_0 = arith.constant 0 : i32
    return %arg0, %c0_i32 : i32, i32
  }
  func.func @transform_1(%arg0: i32) -> (i32, i32) {
    %c0_i32 = arith.constant 0 : i32
    %c0_i32_0 = arith.constant 0 : i32
    %c0_i32_1 = arith.constant 0 : i32
    return %c0_i32, %c0_i32_0 : i32, i32
  }
  func.func @transform_2(%arg0: i32) -> (i32, i32) {
    %c0_i32 = arith.constant 0 : i32
    %c0_i32_0 = arith.constant 0 : i32
    %c0_i32_1 = arith.constant 0 : i32
    return %c0_i32, %c0_i32_0 : i32, i32
  }
  func.func @transform_3(%arg0: i32) -> (i32, i32) {
    %c0_i32 = arith.constant 0 : i32
    %c0_i32_0 = arith.constant 0 : i32
    %c0_i32_1 = arith.constant 0 : i32
    return %c0_i32, %c0_i32_0 : i32, i32
  }
  func.func @transform_4(%arg0: i32) -> (i32, i32) {
    %c0_i32 = arith.constant 0 : i32
    %c0_i32_0 = arith.constant 0 : i32
    %c0_i32_1 = arith.constant 0 : i32
    return %c0_i32, %c0_i32_0 : i32, i32
  }
  func.func @transform_5(%arg0: i32) -> (i32, i32) {
    %c0_i32 = arith.constant 0 : i32
    %c0_i32_0 = arith.constant 0 : i32
    %c0_i32_1 = arith.constant 0 : i32
    return %c0_i32, %c0_i32_0 : i32, i32
  }
  func.func @transform_6(%arg0: i32) -> (i32, i32) {
    %c0_i32 = arith.constant 0 : i32
    %c0_i32_0 = arith.constant 0 : i32
    %c0_i32_1 = arith.constant 0 : i32
    return %c0_i32, %c0_i32_0 : i32, i32
  }
  func.func @transform_7(%arg0: i32) -> (i32, i32) {
    %c0_i32 = arith.constant 0 : i32
    %c0_i32_0 = arith.constant 0 : i32
    return %arg0, %c0_i32 : i32, i32
  }
}

</mosaic_0001>

<bundles_post_ra>
// kernel: tpu_custom_call.1
= control target key start
LH: loop header
LB: loop body
LE: loop exit
PB: predicated region body
PF: predicated region fallthrough
CT: control target
= control target key end

     0   :  { %s1437_s0 = inlined_call_operand.vmem [shape: f32[2,32], index: 0, kind: input, shape index: {}]   ;;  %s1438_s1 = inlined_call_operand.hbm [shape: bf16[32,256], index: 1, kind: input, shape index: {}]   ;;  %s1439_s2 = inlined_call_operand.vmem [shape: f32[1,256], index: 2, kind: input, shape index: {}]   ;;  %s1440_s3 = inlined_call_operand.hbm [shape: bf16[256,128], index: 3, kind: input, shape index: {}]   ;;  %s1441_s4 = inlined_call_operand.vmem [shape: f32[1,128], index: 4, kind: input, shape index: {}]   ;;  %s1442_s5 = inlined_call_operand.vmem [shape: f32[1,128], index: 5, kind: input, shape index: {}]   ;;  %s1443_s6 = inlined_call_operand.<no memory space> [shape: f32[1,1], index: 6, kind: input, shape index: {}]   ;;  %s1444_s7 = inlined_call_operand.vmem [shape: f32[2,1], index: 7, kind: output, shape index: {}]  }
   0x1   :  { %v12_v0 = vstv %s1443_s6 }
   0x2   :  { %13 = vst [vmem:[#allocation2] sm:$0x1] %v12_v0 }
   0x3   :  { %14 = vsyncpa [#allocation4], 0 }
   0x4   :  { %15 = vsyncpa [#allocation6], 0  ;;  %s1163_s26 = smov [#allocation3]   ;;  %s1115_s30 = scalar_lea.hbm %s1438_s1, 512 }
   0x5   :  { %s23_s27 = sshll.u32 %s1163_s26, 4  ;;  %p1116_p0 = scmp.ne.s32.totalorder %s1438_s1, %s1115_s30  ;;  %s24_s27 = int_to_ptr.vmem [resolvable:$true] %s23_s27 }
   0x6   :  { %p1119_p1 = scmp.lt.u32.totalorder %s1115_s30, %s1438_s1 }
   0x8   :  { %p1121_p2 = pnand %p1119_p1, %p1116_p0 }
   0xa   :  { %1124 = shalt.err (!%p1121_p2)
}
   0xb   :  { %s1125_s6 = scalar_lea.vmem %s24_s27, 512  ;;  %p1130_p4 = scmp.lt.s32.totalorder %s24_s27, %s24_s27 }
   0xc   :  { %p1126_p3 = scmp.ne.s32.totalorder %s24_s27, %s1125_s6  ;;  %p1131_p5 = scmp.lt.s32.totalorder %s1125_s6, %s1125_s6 }
   0xe   :  { %p1132_p6 = por %p1131_p5, %p1130_p4 }
  0x10   :  { %p1133_p7 = pnand %p1132_p6, %p1126_p3 }
  0x12   :  { %1136 = shalt.err (!%p1133_p7)
}
  0x13   :  { %s1164_s12 = smov 128   ;;  %s1165_s13 = smov 8  }
  0x14   :  { %29 = dma.hbm_to_vmem [thread:$0]  %s1438_s1, 512, %s24_s27, [#allocation4], %s1164_s12, %s1164_s12, %s1165_s13  }
  0x15   :  { %s1166_s16 = smov [#allocation5]   ;;  %s1137_s20 = scalar_lea.hbm %s1440_s3, 2048 }
  0x16   :  { %s37_s17 = sshll.u32 %s1166_s16, 4  ;;  %p1138_p8 = scmp.ne.s32.totalorder %s1440_s3, %s1137_s20  ;;  %s38_s17 = int_to_ptr.vmem [resolvable:$true] %s37_s17 }
  0x17   :  { %p1141_p9 = scmp.lt.u32.totalorder %s1137_s20, %s1440_s3 }
  0x19   :  { %p1143_p10 = pnand %p1141_p9, %p1138_p8 }
  0x1b   :  { %1146 = shalt.err (!%p1143_p10)
}
  0x1c   :  { %s1147_s25 = scalar_lea.vmem %s38_s17, 2048  ;;  %p1152_p12 = scmp.lt.s32.totalorder %s38_s17, %s38_s17 }
  0x1d   :  { %p1148_p11 = scmp.ne.s32.totalorder %s38_s17, %s1147_s25  ;;  %p1153_p13 = scmp.lt.s32.totalorder %s1147_s25, %s1147_s25 }
  0x1f   :  { %p1154_p0 = por %p1153_p13, %p1152_p12 }
  0x21   :  { %p1155_p1 = pnand %p1154_p0, %p1148_p11 }
  0x23   :  { %1158 = shalt.err (!%p1155_p1)
}
  0x24   :  { %s1167_s1 = smov 64   ;;  %s1168_s26 = smov 4  }
  0x25   :  { %43 = dma.hbm_to_vmem [thread:$0]  %s1440_s3, 2048, %s38_s17, [#allocation6], %s1167_s1, %s1167_s1, %s1168_s26  }
  0x26   :  { %1159 = dma.done.wait [#allocation4], 512  }
  0x27   :  { %1160 = vsyncadd [#allocation4], 4294966784 }
  0x28   :  { %1161 = dma.done.wait [#allocation6], 2048  }
  0x29   :  { %1162 = vsyncadd [#allocation6], 4294965248  ;;  %v1169_v1 = vmov 0   ;;  %v997_v2 = vld [vmem:[#allocation3 + $0x4] ss:$8 sps:$4 sm:$0xff]   ;;  %vm117_vm0 = vcmask 261120   ;;  %v87_v46 = vlaneseq }
  0x2a   :  { %174 = vmatprep.mubr.bf16.mxu0 %v1169_v1  ;;  %v999_v3 = vld [vmem:[#allocation3] ss:$8 sps:$4 sm:$0xff]   ;;  %142 = vmatprep.subr.bf16.mxu0 %v997_v2  ;;  %v1000_v4 = vld [vmem:[#allocation3 + $0x14] ss:$8 sps:$4 sm:$0xff]   ;;  %v1002_v5 = vld [vmem:[#allocation3 + $0x10] ss:$8 sps:$4 sm:$0xff]  }
  0x2b   :  { %143 = vmatpush1.bf16.msra.mxu0 %v999_v3  ;;  %v57_v6 = vld [vmem:[%s1437_s0] sm:$0xff]  ;;  %v58_v7 = vld [vmem:[%s1437_s0 + $0x8] sm:$0xff]  ;;  %v59_v10 = vld [vmem:[%s1437_s0 + $0x10] sm:$0xff]  ;;  %v88_v47 = vshrl.u32 %v87_v46, 7  ;;  %vm821_vm1 = vcmask 7168  }
  0x2c   :  { %144 = vmatprep.subr.bf16.mxu0 %v1000_v4  ;;  %v73_v8 = vpack.c.bf16 %v58_v7, %v57_v6  ;;  %v1003_v9 = vld [vmem:[#allocation5 + $0x40] sm:$0xff]   ;;  %v60_v11 = vld [vmem:[%s1437_s0 + $0x18] sm:$0xff]  ;;  %v1005_v13 = vld [vmem:[#allocation5 + $0x48] sm:$0xff]  }
  0x2d   :  { %v1004_v12 = vld [vmem:[#allocation5] sm:$0xff]   ;;  %v1006_v14 = vld [vmem:[#allocation5 + $0x8] sm:$0xff]   ;;  %974 = vmatprep.subr.bf16.mxu1 %v1003_v9  ;;  %v74_v15 = vpack.c.bf16 %v60_v11, %v59_v10  ;;  %v64_v20 = vld [vmem:[%s1437_s0 + $0x38] sm:$0xff]  ;;  %v89_v48 = vsub.s32 0, %v88_v47  ;;  %v93_v50 = vsub.s32 1, %v88_v47 }
  0x2e   :  { %982 = vmatpush3.bf16.msra.mxu1 %v1004_v12  ;;  %v61_v16 = vld [vmem:[%s1437_s0 + $0x20] sm:$0xff]  ;;  %v62_v17 = vld [vmem:[%s1437_s0 + $0x28] sm:$0xff]  ;;  %v63_v19 = vld [vmem:[%s1437_s0 + $0x30] sm:$0xff] }
  0x2f   :  { %145 = vmatpush1.bf16.msra.mxu0 %v1002_v5  ;;  %975 = vmatprep.subr.bf16.mxu1 %v1005_v13  ;;  %v75_v18 = vpack.c.bf16 %v62_v17, %v61_v16  ;;  %v76_v21 = vpack.c.bf16 %v64_v20, %v63_v19  ;;  %v65_v22 = vld [vmem:[%s1437_s0 + $0x40] sm:$0xff]  ;;  %v66_v23 = vld [vmem:[%s1437_s0 + $0x48] sm:$0xff]  ;;  %v67_v25 = vld [vmem:[%s1437_s0 + $0x50] sm:$0xff] }
  0x30   :  { %910 = vmatprep.subr.bf16.mxu0 %v1003_v9  ;;  %v77_v24 = vpack.c.bf16 %v66_v23, %v65_v22  ;;  %v68_v26 = vld [vmem:[%s1437_s0 + $0x58] sm:$0xff]  ;;  %v69_v28 = vld [vmem:[%s1437_s0 + $0x60] sm:$0xff]  ;;  %v70_v29 = vld [vmem:[%s1437_s0 + $0x68] sm:$0xff] }
  0x31   :  { %v78_v27 = vpack.c.bf16 %v68_v26, %v67_v25  ;;  %v79_v30 = vpack.c.bf16 %v70_v29, %v69_v28  ;;  %v71_v31 = vld [vmem:[%s1437_s0 + $0x70] sm:$0xff]  ;;  %v72_v32 = vld [vmem:[%s1437_s0 + $0x78] sm:$0xff]  ;;  %v1011_v38 = vld [vmem:[#allocation5 + $0x60] sm:$0xff]  }
  0x32   :  { %883 = vmatmul.mubr.msk.bf16.vlgmr.msra.gmra.mrb[0].mxu0 %vm117_vm0, %v73_v8  ;;  %983 = vmatpush3.bf16.msra.mxu1 %v1006_v14  ;;  %v80_v33 = vpack.c.bf16 %v72_v32, %v71_v31  ;;  %v1007_v34 = vld [vmem:[#allocation5 + $0x50] sm:$0xff]   ;;  %v1009_v36 = vld [vmem:[#allocation5 + $0x58] sm:$0xff]   ;;  %v1012_v39 = vld [vmem:[#allocation5 + $0x20] sm:$0xff]  }
  0x33   :  { %184 = vmatprep.mubr.bf16.mxu0 %v1169_v1  ;;  %911 = vmatpush3.bf16.msra.mxu0 %v1004_v12  ;;  %v1008_v35 = vld [vmem:[#allocation5 + $0x10] sm:$0xff]   ;;  %v1010_v37 = vld [vmem:[#allocation5 + $0x18] sm:$0xff]   ;;  %v1013_v40 = vld [vmem:[#allocation5 + $0x68] sm:$0xff]  }
  0x34   :  { %912 = vmatprep.subr.bf16.mxu0 %v1005_v13  ;;  %976 = vmatprep.subr.bf16.mxu1 %v1007_v34  ;;  %v1014_v41 = vld [vmem:[#allocation5 + $0x28] sm:$0xff]   ;;  %v1015_v42 = vld [vmem:[#allocation5 + $0x70] sm:$0xff]   ;;  %v1017_v44 = vld [vmem:[#allocation5 + $0x78] sm:$0xff]  }
  0x35   :  { %v1016_v43 = vld [vmem:[#allocation5 + $0x30] sm:$0xff]   ;;  %v1018_v45 = vld [vmem:[#allocation5 + $0x38] sm:$0xff]  }
  0x36   :  { %984 = vmatpush3.bf16.msra.mxu1 %v1008_v35  ;;  %v85_v49 = vld [vmem:[%s1439_s2] sm:$0x3] }
  0x37   :  { %913 = vmatpush3.bf16.msra.mxu0 %v1006_v14  ;;  %977 = vmatprep.subr.bf16.mxu1 %v1009_v36  ;;  %v1296_v51 = vrot.slane %v85_v49, %v89_v48  ;;  %v1298_v52 = vrot.slane %v85_v49, %v93_v50 }
  0x38   :  { %914 = vmatprep.subr.bf16.mxu0 %v1007_v34 }
  0x3a   :  { %884 = vmatmul.mubr.msk.bf16.gmra.mrb[4].mxu0 %vm117_vm0, %v74_v15  ;;  %985 = vmatpush3.bf16.msra.mxu1 %v1010_v37 }
  0x3b   :  { %194 = vmatprep.mubr.bf16.mxu0 %v1169_v1  ;;  %915 = vmatpush3.bf16.msra.mxu0 %v1008_v35 }
  0x3c   :  { %916 = vmatprep.subr.bf16.mxu0 %v1009_v36  ;;  %978 = vmatprep.subr.bf16.mxu1 %v1011_v38 }
  0x3e   :  { %986 = vmatpush3.bf16.msra.mxu1 %v1012_v39 }
  0x3f   :  { %917 = vmatpush3.bf16.msra.mxu0 %v1010_v37  ;;  %979 = vmatprep.subr.bf16.mxu1 %v1013_v40 }
  0x40   :  { %918 = vmatprep.subr.bf16.mxu0 %v1011_v38 }
  0x42   :  { %885 = vmatmul.mubr.msk.bf16.gmra.mrb[8].mxu0 %vm117_vm0, %v75_v18  ;;  %987 = vmatpush3.bf16.msra.mxu1 %v1014_v41 }
  0x43   :  { %204 = vmatprep.mubr.bf16.mxu0 %v1169_v1  ;;  %919 = vmatpush3.bf16.msra.mxu0 %v1012_v39 }
  0x44   :  { %920 = vmatprep.subr.bf16.mxu0 %v1013_v40  ;;  %980 = vmatprep.subr.bf16.mxu1 %v1015_v42 }
  0x46   :  { %988 = vmatpush3.bf16.msra.mxu1 %v1016_v43 }
  0x47   :  { %921 = vmatpush3.bf16.msra.mxu0 %v1014_v41  ;;  %981 = vmatprep.subr.bf16.mxu1 %v1017_v44 }
  0x48   :  { %922 = vmatprep.subr.bf16.mxu0 %v1015_v42 }
  0x4a   :  { %886 = vmatmul.mubr.msk.bf16.gmra.mrb[12].mxu0 %vm117_vm0, %v76_v21  ;;  %989 = vmatpush3.bf16.msra.mxu1 %v1018_v45 }
  0x4b   :  { %214 = vmatprep.mubr.bf16.mxu0 %v1169_v1  ;;  %923 = vmatpush3.bf16.msra.mxu0 %v1016_v43 }
  0x4c   :  { %924 = vmatprep.subr.bf16.mxu0 %v1017_v44 }
  0x4f   :  { %925 = vmatpush3.bf16.msra.mxu0 %v1018_v45 }
  0x52   :  { %887 = vmatmul.mubr.msk.bf16.gmra.mrb[16].mxu0 %vm117_vm0, %v77_v24 }
  0x53   :  { %224 = vmatprep.mubr.bf16.mxu0 %v1169_v1 }
  0x5a   :  { %888 = vmatmul.mubr.msk.bf16.gmra.mrb[20].mxu0 %vm117_vm0, %v78_v27 }
  0x5b   :  { %234 = vmatprep.mubr.bf16.mxu0 %v1169_v1 }
  0x62   :  { %889 = vmatmul.mubr.msk.bf16.gmra.mrb[24].mxu0 %vm117_vm0, %v79_v30 }
  0x63   :  { %244 = vmatprep.mubr.bf16.mxu0 %v1169_v1 }
  0x6a   :  { %890 = vmatmul.mubr.msk.bf16.gmra.mrb[28].mxu0 %vm117_vm0, %v80_v33 }
 0x105   :  { %v176_v53 = vpop.f32.mrb[0].mxu0 }
 0x106   :  { %v177_v54 = vadd.f32 %v176_v53, %v1296_v51  ;;  %v178_v55 = vpop.f32.mrb[1].mxu0 }
 0x107   :  { %v179_v56 = vadd.f32 %v178_v55, %v1298_v52  ;;  %v180_v57 = vpop.f32.mrb[2].mxu0 }
 0x108   :  { %v287_v58 = vmul.f32 0.70710677, %v177_v54  ;;  %v181_v59 = vadd.f32 %v180_v57, %v1296_v51  ;;  %v182_v60 = vpop.f32.mrb[3].mxu0  ;;  %v255_v22 = vmul.f32 0.5, %v177_v54 }
 0x109   :  { %v288_v61 = vmul.f32 0.70710677, %v179_v56  ;;  %v183_v62 = vadd.f32 %v182_v60, %v1298_v52  ;;  %v256_v27 = vmul.f32 0.5, %v179_v56 }
 0x10a   :  { %1019 = verf.f32 %v287_v58  ;;  %v289_v63 = vmul.f32 0.70710677, %v181_v59  ;;  %v257_v23 = vmul.f32 0.5, %v181_v59 }
 0x10b   :  { %1021 = verf.f32 %v288_v61  ;;  %v290_v0 = vmul.f32 0.70710677, %v183_v62  ;;  %v258_v28 = vmul.f32 0.5, %v183_v62 }
 0x10c   :  { %1023 = verf.f32 %v289_v63 }
 0x10d   :  { %1025 = verf.f32 %v290_v0  ;;  %v186_v1 = vpop.f32.mrb[4].mxu0 }
 0x10e   :  { %v187_v2 = vadd.f32 %v186_v1, %v1296_v51  ;;  %v188_v3 = vpop.f32.mrb[5].mxu0 }
 0x10f   :  { %v189_v4 = vadd.f32 %v188_v3, %v1298_v52  ;;  %v190_v5 = vpop.f32.mrb[6].mxu0 }
 0x110   :  { %v291_v6 = vmul.f32 0.70710677, %v187_v2  ;;  %v191_v7 = vadd.f32 %v190_v5, %v1296_v51  ;;  %v192_v8 = vpop.f32.mrb[7].mxu0  ;;  %v259_v47 = vmul.f32 0.5, %v187_v2 }
 0x111   :  { %v292_v9 = vmul.f32 0.70710677, %v189_v4  ;;  %v1308_v10 = vadd.f32 %v192_v8, %v1298_v52  ;;  %v260_v59 = vmul.f32 0.5, %v189_v4 }
 0x112   :  { %1027 = verf.f32 %v291_v6  ;;  %v293_v11 = vmul.f32 0.70710677, %v191_v7  ;;  %v261_v54 = vmul.f32 0.5, %v191_v7 }
 0x113   :  { %1029 = verf.f32 %v292_v9  ;;  %v294_v12 = vmul.f32 0.70710677, %v1308_v10  ;;  %v262_v1 = vmul.f32 0.5, %v1308_v10 }
 0x114   :  { %v1020_v13 = vpop.eup %1019  ;;  %1031 = verf.f32 %v293_v11 }
 0x115   :  { %v1022_v14 = vpop.eup %1021  ;;  %v351_v15 = vadd.f32 1.0, %v1020_v13  ;;  %1033 = verf.f32 %v294_v12  ;;  %v196_v16 = vpop.f32.mrb[8].mxu0 }
 0x116   :  { %v1024_v17 = vpop.eup %1023  ;;  %v352_v18 = vadd.f32 1.0, %v1022_v14  ;;  %v1312_v19 = vadd.f32 %v196_v16, %v1296_v51  ;;  %v198_v20 = vpop.f32.mrb[9].mxu0 }
 0x117   :  { %v1026_v21 = vpop.eup %1025  ;;  %v353_v24 = vadd.f32 1.0, %v1024_v17  ;;  %v1315_v25 = vadd.f32 %v198_v20, %v1298_v52  ;;  %v200_v26 = vpop.f32.mrb[10].mxu0  ;;  %v383_v32 = vmul.f32 %v351_v15, %v255_v22 }
 0x118   :  { %v354_v29 = vadd.f32 1.0, %v1026_v21  ;;  %v295_v30 = vmul.f32 0.70710677, %v1312_v19  ;;  %v202_v31 = vpop.f32.mrb[11].mxu0  ;;  %v201_v35 = vadd.f32 %v200_v26, %v1296_v51  ;;  %v384_v36 = vmul.f32 %v352_v18, %v256_v27 }
 0x119   :  { %v385_v33 = vmul.f32 %v353_v24, %v257_v23  ;;  %v296_v34 = vmul.f32 0.70710677, %v1315_v25  ;;  %v203_v38 = vadd.f32 %v202_v31, %v1298_v52  ;;  %v263_v18 = vmul.f32 0.5, %v1312_v19 }
 0x11a   :  { %v386_v37 = vmul.f32 %v354_v29, %v258_v28  ;;  %1035 = verf.f32 %v295_v30  ;;  %v297_v40 = vmul.f32 0.70710677, %v201_v35  ;;  %v264_v24 = vmul.f32 0.5, %v1315_v25 }
 0x11b   :  { %v415_v39 = vpack.c.bf16 %v385_v33, %v383_v32  ;;  %1037 = verf.f32 %v296_v34  ;;  %v298_v42 = vmul.f32 0.70710677, %v203_v38  ;;  %v265_v26 = vmul.f32 0.5, %v201_v35 }
 0x11c   :  { %v1028_v41 = vpop.eup %1027  ;;  %v416_v43 = vpack.c.bf16 %v386_v37, %v384_v36  ;;  %1039 = verf.f32 %v297_v40  ;;  %v266_v30 = vmul.f32 0.5, %v203_v38 }
 0x11d   :  { %v1030_v44 = vpop.eup %1029  ;;  %v206_v45 = vpop.f32.mrb[12].mxu0  ;;  %v355_v48 = vadd.f32 1.0, %v1028_v41  ;;  %1041 = verf.f32 %v298_v42 }
 0x11e   :  { %v1032_v46 = vpop.eup %1031  ;;  %v1322_v49 = vadd.f32 %v206_v45, %v1296_v51  ;;  %v208_v50 = vpop.f32.mrb[13].mxu0  ;;  %598 = vmatprep.mubr.bf16.mxu0 %v416_v43  ;;  %v356_v58 = vadd.f32 1.0, %v1030_v44 }
 0x11f   :  { %v1034_v53 = vpop.eup %1033  ;;  %v357_v55 = vadd.f32 1.0, %v1032_v46  ;;  %v1325_v56 = vadd.f32 %v208_v50, %v1298_v52  ;;  %v210_v57 = vpop.f32.mrb[14].mxu0  ;;  %599 = vmatmul.mubr.bf16.vlgmr.msra.gmra.mrb[32].mxu0 %v415_v39  ;;  %v387_v5 = vmul.f32 %v355_v48, %v259_v47 }
 0x120   :  { %v299_v60 = vmul.f32 0.70710677, %v1322_v49  ;;  %v1329_v61 = vadd.f32 %v210_v57, %v1296_v51  ;;  %v212_v62 = vpop.f32.mrb[15].mxu0  ;;  %v358_v63 = vadd.f32 1.0, %v1034_v53  ;;  %v388_v7 = vmul.f32 %v356_v58, %v260_v59 }
 0x121   :  { %v389_v0 = vmul.f32 %v357_v55, %v261_v54  ;;  %v300_v2 = vmul.f32 0.70710677, %v1325_v56  ;;  %v1334_v3 = vadd.f32 %v212_v62, %v1298_v52  ;;  %v267_v53 = vmul.f32 0.5, %v1322_v49 }
 0x122   :  { %1043 = verf.f32 %v299_v60  ;;  %v301_v6 = vmul.f32 0.70710677, %v1329_v61  ;;  %v390_v8 = vmul.f32 %v358_v63, %v262_v1  ;;  %v269_v54 = vmul.f32 0.5, %v1329_v61 }
 0x123   :  { %1045 = verf.f32 %v300_v2  ;;  %v302_v4 = vmul.f32 0.70710677, %v1334_v3  ;;  %v417_v11 = vpack.c.bf16 %v389_v0, %v387_v5  ;;  %v268_v59 = vmul.f32 0.5, %v1325_v56 }
 0x124   :  { %v1036_v9 = vpop.eup %1035  ;;  %1047 = verf.f32 %v301_v6  ;;  %v418_v13 = vpack.c.bf16 %v390_v8, %v388_v7  ;;  %v270_v60 = vmul.f32 0.5, %v1334_v3 }
 0x125   :  { %v1038_v12 = vpop.eup %1037  ;;  %1049 = verf.f32 %v302_v4  ;;  %v216_v10 = vpop.f32.mrb[16].mxu0  ;;  %v359_v14 = vadd.f32 1.0, %v1036_v9 }
 0x126   :  { %v1339_v15 = vadd.f32 %v216_v10, %v1296_v51  ;;  %v218_v16 = vpop.f32.mrb[17].mxu0  ;;  %v1040_v17 = vpop.eup %1039  ;;  %v360_v20 = vadd.f32 1.0, %v1038_v12  ;;  %606 = vmatprep.mubr.bf16.mxu1 %v418_v13 }
 0x127   :  { %v1343_v21 = vadd.f32 %v218_v16, %v1298_v52  ;;  %v220_v22 = vpop.f32.mrb[18].mxu0  ;;  %v1042_v23 = vpop.eup %1041  ;;  %v361_v27 = vadd.f32 1.0, %v1040_v17  ;;  %607 = vmatmul.mubr.bf16.vlgmr.msra.gmra.mrb[0].mxu1 %v417_v11  ;;  %v391_v33 = vmul.f32 %v359_v14, %v263_v18 }
 0x128   :  { %v303_v28 = vmul.f32 0.70710677, %v1339_v15  ;;  %v222_v29 = vpop.f32.mrb[19].mxu0  ;;  %v362_v31 = vadd.f32 1.0, %v1042_v23  ;;  %v1349_v19 = vadd.f32 %v220_v22, %v1296_v51  ;;  %v392_v25 = vmul.f32 %v360_v20, %v264_v24 }
 0x129   :  { %v304_v32 = vmul.f32 0.70710677, %v1343_v21  ;;  %v393_v34 = vmul.f32 %v361_v27, %v265_v26  ;;  %v1352_v36 = vadd.f32 %v222_v29, %v1298_v52  ;;  %v271_v17 = vmul.f32 0.5, %v1339_v15 }
 0x12a   :  { %1051 = verf.f32 %v303_v28  ;;  %v394_v35 = vmul.f32 %v362_v31, %v266_v30  ;;  %v305_v37 = vmul.f32 0.70710677, %v1349_v19  ;;  %v272_v24 = vmul.f32 0.5, %v1343_v21 }
 0x12b   :  { %1053 = verf.f32 %v304_v32  ;;  %v306_v38 = vmul.f32 0.70710677, %v1352_v36  ;;  %v419_v40 = vpack.c.bf16 %v393_v34, %v391_v33  ;;  %v273_v26 = vmul.f32 0.5, %v1349_v19 }
 0x12c   :  { %v1044_v39 = vpop.eup %1043  ;;  %1055 = verf.f32 %v305_v37  ;;  %v420_v44 = vpack.c.bf16 %v394_v35, %v392_v25  ;;  %v274_v30 = vmul.f32 0.5, %v1352_v36 }
 0x12d   :  { %v1046_v41 = vpop.eup %1045  ;;  %v363_v42 = vadd.f32 1.0, %v1044_v39  ;;  %v226_v43 = vpop.f32.mrb[20].mxu0  ;;  %1057 = verf.f32 %v306_v38 }
 0x12e   :  { %v1048_v45 = vpop.eup %1047  ;;  %v364_v46 = vadd.f32 1.0, %v1046_v41  ;;  %v1357_v47 = vadd.f32 %v226_v43, %v1296_v51  ;;  %v228_v48 = vpop.f32.mrb[21].mxu0  ;;  %614 = vmatprep.mubr.bf16.mxu1 %v420_v44 }
 0x12f   :  { %v1050_v50 = vpop.eup %1049  ;;  %v365_v55 = vadd.f32 1.0, %v1048_v45  ;;  %v1362_v57 = vadd.f32 %v228_v48, %v1298_v52  ;;  %v230_v58 = vpop.f32.mrb[22].mxu0  ;;  %615 = vmatmul.mubr.bf16.gmra.mrb[4].mxu1 %v419_v40  ;;  %v395_v1 = vmul.f32 %v363_v42, %v267_v53 }
 0x130   :  { %v366_v62 = vadd.f32 1.0, %v1050_v50  ;;  %v307_v63 = vmul.f32 0.70710677, %v1357_v47  ;;  %v232_v0 = vpop.f32.mrb[23].mxu0  ;;  %v231_v61 = vadd.f32 %v230_v58, %v1296_v51  ;;  %v396_v5 = vmul.f32 %v364_v46, %v268_v59 }
 0x131   :  { %v397_v2 = vmul.f32 %v365_v55, %v269_v54  ;;  %v308_v49 = vmul.f32 0.70710677, %v1362_v57  ;;  %v233_v4 = vadd.f32 %v232_v0, %v1298_v52  ;;  %v275_v46 = vmul.f32 0.5, %v1357_v47 }
 0x132   :  { %v398_v6 = vmul.f32 %v366_v62, %v270_v60  ;;  %1059 = verf.f32 %v307_v63  ;;  %v309_v56 = vmul.f32 0.70710677, %v231_v61  ;;  %v276_v55 = vmul.f32 0.5, %v1362_v57 }
 0x133   :  { %1061 = verf.f32 %v308_v49  ;;  %v421_v7 = vpack.c.bf16 %v397_v2, %v395_v1  ;;  %v310_v8 = vmul.f32 0.70710677, %v233_v4  ;;  %v277_v58 = vmul.f32 0.5, %v231_v61 }
 0x134   :  { %v1052_v3 = vpop.eup %1051  ;;  %v422_v9 = vpack.c.bf16 %v398_v6, %v396_v5  ;;  %1063 = verf.f32 %v309_v56  ;;  %v278_v63 = vmul.f32 0.5, %v233_v4 }
 0x135   :  { %v1054_v11 = vpop.eup %1053  ;;  %v236_v12 = vpop.f32.mrb[24].mxu0  ;;  %v367_v10 = vadd.f32 1.0, %v1052_v3  ;;  %1065 = verf.f32 %v310_v8 }
 0x136   :  { %v1371_v13 = vadd.f32 %v236_v12, %v1296_v51  ;;  %v238_v14 = vpop.f32.mrb[25].mxu0  ;;  %622 = vmatprep.mubr.bf16.mxu1 %v422_v9  ;;  %v1056_v16 = vpop.eup %1055  ;;  %v368_v18 = vadd.f32 1.0, %v1054_v11 }
 0x137   :  { %v1375_v20 = vadd.f32 %v238_v14, %v1298_v52  ;;  %v240_v22 = vpop.f32.mrb[26].mxu0  ;;  %v1058_v23 = vpop.eup %1057  ;;  %v369_v27 = vadd.f32 1.0, %v1056_v16  ;;  %623 = vmatmul.mubr.bf16.gmra.mrb[8].mxu1 %v421_v7  ;;  %v399_v33 = vmul.f32 %v367_v10, %v271_v17 }
 0x138   :  { %v311_v28 = vmul.f32 0.70710677, %v1371_v13  ;;  %v242_v29 = vpop.f32.mrb[27].mxu0  ;;  %v370_v31 = vadd.f32 1.0, %v1058_v23  ;;  %v241_v32 = vadd.f32 %v240_v22, %v1296_v51  ;;  %v400_v21 = vmul.f32 %v368_v18, %v272_v24 }
 0x139   :  { %v312_v15 = vmul.f32 0.70710677, %v1375_v20  ;;  %v401_v34 = vmul.f32 %v369_v27, %v273_v26  ;;  %v243_v25 = vadd.f32 %v242_v29, %v1298_v52  ;;  %v279_v10 = vmul.f32 0.5, %v1371_v13 }
 0x13a   :  { %1067 = verf.f32 %v311_v28  ;;  %v402_v35 = vmul.f32 %v370_v31, %v274_v30  ;;  %v313_v19 = vmul.f32 0.70710677, %v241_v32  ;;  %v281_v14 = vmul.f32 0.5, %v241_v32 }
 0x13b   :  { %1069 = verf.f32 %v312_v15  ;;  %v314_v39 = vmul.f32 0.70710677, %v243_v25  ;;  %v423_v38 = vpack.c.bf16 %v401_v34, %v399_v33  ;;  %v280_v16 = vmul.f32 0.5, %v1375_v20 }
 0x13c   :  { %v1060_v37 = vpop.eup %1059  ;;  %1071 = verf.f32 %v313_v19  ;;  %v424_v41 = vpack.c.bf16 %v402_v35, %v400_v21  ;;  %v282_v17 = vmul.f32 0.5, %v243_v25 }
 0x13d   :  { %v1062_v40 = vpop.eup %1061  ;;  %v246_v36 = vpop.f32.mrb[28].mxu0  ;;  %v371_v42 = vadd.f32 1.0, %v1060_v37  ;;  %1073 = verf.f32 %v314_v39 }
 0x13e   :  { %v247_v43 = vadd.f32 %v246_v36, %v1296_v51  ;;  %v248_v44 = vpop.f32.mrb[29].mxu0  ;;  %v1064_v45 = vpop.eup %1063  ;;  %v372_v48 = vadd.f32 1.0, %v1062_v40  ;;  %630 = vmatprep.mubr.bf16.mxu1 %v424_v41 }
 0x13f   :  { %v249_v50 = vadd.f32 %v248_v44, %v1298_v52  ;;  %v250_v53 = vpop.f32.mrb[30].mxu0  ;;  %v1066_v54 = vpop.eup %1065  ;;  %v373_v59 = vadd.f32 1.0, %v1064_v45  ;;  %631 = vmatmul.mubr.bf16.gmra.mrb[12].mxu1 %v423_v38  ;;  %v403_v49 = vmul.f32 %v371_v42, %v275_v46  ;;  %v1395_v42 = vld [vmem:[%s1441_s4] ss:$0 sm:$0xff] }
 0x140   :  { %v315_v60 = vmul.f32 0.70710677, %v247_v43  ;;  %v252_v62 = vpop.f32.mrb[31].mxu0  ;;  %v374_v0 = vadd.f32 1.0, %v1066_v54  ;;  %v251_v2 = vadd.f32 %v250_v53, %v1296_v51  ;;  %v404_v6 = vmul.f32 %v372_v48, %v276_v55 }
 0x141   :  { %v316_v1 = vmul.f32 0.70710677, %v249_v50  ;;  %v405_v47 = vmul.f32 %v373_v59, %v277_v58  ;;  %v253_v5 = vadd.f32 %v252_v62, %v1298_v52  ;;  %v283_v32 = vmul.f32 0.5, %v247_v43 }
 0x142   :  { %1075 = verf.f32 %v315_v60  ;;  %v406_v56 = vmul.f32 %v374_v0, %v278_v63  ;;  %v317_v7 = vmul.f32 0.70710677, %v251_v2  ;;  %v285_v34 = vmul.f32 0.5, %v251_v2 }
 0x143   :  { %1077 = verf.f32 %v316_v1  ;;  %v318_v61 = vmul.f32 0.70710677, %v253_v5  ;;  %v425_v3 = vpack.c.bf16 %v405_v47, %v403_v49  ;;  %v284_v20 = vmul.f32 0.5, %v249_v50 }
 0x144   :  { %v1068_v57 = vpop.eup %1067  ;;  %1079 = verf.f32 %v317_v7  ;;  %v426_v9 = vpack.c.bf16 %v406_v56, %v404_v6  ;;  %v286_v25 = vmul.f32 0.5, %v253_v5 }
 0x145   :  { %v1070_v8 = vpop.eup %1069  ;;  %v375_v4 = vadd.f32 1.0, %v1068_v57  ;;  %1081 = verf.f32 %v318_v61 }
 0x146   :  { %v1072_v11 = vpop.eup %1071  ;;  %v376_v12 = vadd.f32 1.0, %v1070_v8  ;;  %638 = vmatprep.mubr.bf16.mxu1 %v426_v9 }
 0x147   :  { %v1074_v51 = vpop.eup %1073  ;;  %v377_v52 = vadd.f32 1.0, %v1072_v11  ;;  %639 = vmatmul.mubr.bf16.gmra.mrb[16].mxu1 %v425_v3  ;;  %v407_v22 = vmul.f32 %v375_v4, %v279_v10  ;;  %v1404_v4 = vld [vmem:[%s1442_s5] ss:$0 sm:$0xff] }
 0x148   :  { %v378_v18 = vadd.f32 1.0, %v1074_v51  ;;  %v408_v24 = vmul.f32 %v376_v12, %v280_v16 }
 0x149   :  { %v409_v23 = vmul.f32 %v377_v52, %v281_v14 }
 0x14a   :  { %v410_v26 = vmul.f32 %v378_v18, %v282_v17 }
 0x14b   :  { %v427_v28 = vpack.c.bf16 %v409_v23, %v407_v22 }
 0x14c   :  { %v1076_v27 = vpop.eup %1075  ;;  %v428_v30 = vpack.c.bf16 %v410_v26, %v408_v24 }
 0x14d   :  { %v1078_v29 = vpop.eup %1077  ;;  %v379_v31 = vadd.f32 1.0, %v1076_v27 }
 0x14e   :  { %v1080_v15 = vpop.eup %1079  ;;  %v380_v33 = vadd.f32 1.0, %v1078_v29  ;;  %646 = vmatprep.mubr.bf16.mxu1 %v428_v30 }
 0x14f   :  { %v1082_v13 = vpop.eup %1081  ;;  %v381_v21 = vadd.f32 1.0, %v1080_v15  ;;  %647 = vmatmul.mubr.bf16.gmra.mrb[20].mxu1 %v427_v28  ;;  %v411_v19 = vmul.f32 %v379_v31, %v283_v32 }
 0x150   :  { %v382_v35 = vadd.f32 1.0, %v1082_v13  ;;  %v412_v39 = vmul.f32 %v380_v33, %v284_v20 }
 0x151   :  { %v413_v37 = vmul.f32 %v381_v21, %v285_v34 }
 0x152   :  { %v414_v38 = vmul.f32 %v382_v35, %v286_v25 }
 0x153   :  { %v429_v40 = vpack.c.bf16 %v413_v37, %v411_v19 }
 0x154   :  { %v430_v36 = vpack.c.bf16 %v414_v38, %v412_v39 }
 0x156   :  { %654 = vmatprep.mubr.bf16.mxu1 %v430_v36 }
 0x157   :  { %655 = vmatmul.mubr.bf16.gmra.mrb[24].mxu1 %v429_v40 }
 0x1f2   :  { %v926_v41 = vpop.f32.mrb[32].mxu0 }
 0x1f3   :  { %v927_v43 = vpop.f32.mrb[33].mxu0 }
 0x1f4   :  { %v928_v44 = vadd.f32 %v927_v43, %v926_v41  ;;  %v929_v45 = vpop.f32.mrb[34].mxu0 }
 0x1f5   :  { %v930_v46 = vpop.f32.mrb[35].mxu0 }
 0x1f6   :  { %v601_v48 = vadd.f32 %v928_v44, %v1395_v42  ;;  %v931_v50 = vadd.f32 %v930_v46, %v929_v45 }
 0x1f8   :  { %v679_v53 = vmul.f32 0.70710677, %v601_v48  ;;  %v604_v54 = vadd.f32 %v931_v50, %v1395_v42  ;;  %v663_v61 = vmul.f32 0.5, %v601_v48 }
 0x1fa   :  { %1083 = verf.f32 %v679_v53  ;;  %v680_v55 = vmul.f32 0.70710677, %v604_v54  ;;  %v932_v58 = vpop.f32.mrb[0].mxu1  ;;  %v664_v14 = vmul.f32 0.5, %v604_v54 }
 0x1fb   :  { %v933_v59 = vpop.f32.mrb[1].mxu1 }
 0x1fc   :  { %1085 = verf.f32 %v680_v55  ;;  %v934_v60 = vadd.f32 %v933_v59, %v932_v58  ;;  %v935_v62 = vpop.f32.mrb[2].mxu1 }
 0x1fd   :  { %v936_v63 = vpop.f32.mrb[3].mxu1 }
 0x1fe   :  { %v609_v0 = vadd.f32 %v934_v60, %v1395_v42  ;;  %v937_v1 = vadd.f32 %v936_v63, %v935_v62 }
 0x200   :  { %v681_v2 = vmul.f32 0.70710677, %v609_v0  ;;  %v612_v49 = vadd.f32 %v937_v1, %v1395_v42  ;;  %v665_v31 = vmul.f32 0.5, %v609_v0 }
 0x202   :  { %1087 = verf.f32 %v681_v2  ;;  %v682_v47 = vmul.f32 0.70710677, %v612_v49  ;;  %v938_v5 = vpop.f32.mrb[4].mxu1  ;;  %v666_v34 = vmul.f32 0.5, %v612_v49 }
 0x203   :  { %v939_v56 = vpop.f32.mrb[5].mxu1 }
 0x204   :  { %v1084_v6 = vpop.eup %1083  ;;  %1089 = verf.f32 %v682_v47  ;;  %v940_v7 = vadd.f32 %v939_v56, %v938_v5  ;;  %v941_v57 = vpop.f32.mrb[6].mxu1 }
 0x205   :  { %v711_v3 = vadd.f32 1.0, %v1084_v6  ;;  %v942_v9 = vpop.f32.mrb[7].mxu1 }
 0x206   :  { %v1086_v8 = vpop.eup %1085  ;;  %v617_v11 = vadd.f32 %v940_v7, %v1395_v42  ;;  %v943_v12 = vadd.f32 %v942_v9, %v941_v57 }
 0x207   :  { %v727_v51 = vmul.f32 %v711_v3, %v663_v61  ;;  %v712_v10 = vadd.f32 1.0, %v1086_v8 }
 0x208   :  { %v683_v52 = vmul.f32 0.70710677, %v617_v11  ;;  %v620_v16 = vadd.f32 %v943_v12, %v1395_v42  ;;  %v667_v44 = vmul.f32 0.5, %v617_v11 }
 0x209   :  { %v750_v17 = vmul.f32 %v1404_v4, %v727_v51  ;;  %v728_v18 = vmul.f32 %v712_v10, %v664_v14 }
 0x20a   :  { %1091 = verf.f32 %v683_v52  ;;  %v684_v22 = vmul.f32 0.70710677, %v620_v16  ;;  %v944_v23 = vpop.f32.mrb[8].mxu1  ;;  %v668_v55 = vmul.f32 0.5, %v620_v16 }
 0x20b   :  { %766 = vadd.xlane.f32.xlu0 %v750_v17  ;;  %v945_v24 = vpop.f32.mrb[9].mxu1  ;;  %v751_v29 = vmul.f32 %v1404_v4, %v728_v18 }
 0x20c   :  { %v1088_v26 = vpop.eup %1087  ;;  %1093 = verf.f32 %v684_v22  ;;  %v946_v27 = vadd.f32 %v945_v24, %v944_v23  ;;  %v947_v28 = vpop.f32.mrb[10].mxu1 }
 0x20d   :  { %v948_v30 = vpop.f32.mrb[11].mxu1  ;;  %v713_v15 = vadd.f32 1.0, %v1088_v26 }
 0x20e   :  { %v1090_v33 = vpop.eup %1089  ;;  %v625_v13 = vadd.f32 %v946_v27, %v1395_v42  ;;  %v949_v32 = vadd.f32 %v948_v30, %v947_v28 }
 0x20f   :  { %768 = vadd.xlane.f32.xlu0 %v751_v29  ;;  %v729_v21 = vmul.f32 %v713_v15, %v665_v31  ;;  %v714_v20 = vadd.f32 1.0, %v1090_v33 }
 0x210   :  { %v685_v25 = vmul.f32 0.70710677, %v625_v13  ;;  %v628_v35 = vadd.f32 %v949_v32, %v1395_v42  ;;  %v669_v7 = vmul.f32 0.5, %v625_v13 }
 0x211   :  { %v752_v19 = vmul.f32 %v1404_v4, %v729_v21  ;;  %v730_v37 = vmul.f32 %v714_v20, %v666_v34 }
 0x212   :  { %1095 = verf.f32 %v685_v25  ;;  %v686_v39 = vmul.f32 0.70710677, %v628_v35  ;;  %v950_v38 = vpop.f32.mrb[12].mxu1  ;;  %v670_v11 = vmul.f32 0.5, %v628_v35 }
 0x213   :  { %v951_v40 = vpop.f32.mrb[13].mxu1  ;;  %770 = vadd.xlane.f32.xlu1 %v752_v19  ;;  %v753_v46 = vmul.f32 %v1404_v4, %v730_v37 }
 0x214   :  { %v1092_v36 = vpop.eup %1091  ;;  %1097 = verf.f32 %v686_v39  ;;  %v952_v41 = vadd.f32 %v951_v40, %v950_v38  ;;  %v953_v43 = vpop.f32.mrb[14].mxu1 }
 0x215   :  { %v954_v45 = vpop.f32.mrb[15].mxu1  ;;  %v715_v48 = vadd.f32 1.0, %v1092_v36 }
 0x216   :  { %v1094_v50 = vpop.eup %1093  ;;  %v633_v53 = vadd.f32 %v952_v41, %v1395_v42  ;;  %v955_v54 = vadd.f32 %v954_v45, %v953_v43 }
 0x217   :  { %772 = vadd.xlane.f32.xlu1 %v753_v46  ;;  %v731_v58 = vmul.f32 %v715_v48, %v667_v44  ;;  %v716_v59 = vadd.f32 1.0, %v1094_v50 }
 0x218   :  { %v687_v60 = vmul.f32 0.70710677, %v633_v53  ;;  %v636_v62 = vadd.f32 %v955_v54, %v1395_v42  ;;  %v671_v28 = vmul.f32 0.5, %v633_v53 }
 0x219   :  { %v754_v63 = vmul.f32 %v1404_v4, %v731_v58  ;;  %v732_v0 = vmul.f32 %v716_v59, %v668_v55 }
 0x21a   :  { %1099 = verf.f32 %v687_v60  ;;  %v688_v1 = vmul.f32 0.70710677, %v636_v62  ;;  %v956_v2 = vpop.f32.mrb[16].mxu1  ;;  %v672_v13 = vmul.f32 0.5, %v636_v62 }
 0x21b   :  { %v957_v49 = vpop.f32.mrb[17].mxu1  ;;  %774 = vadd.xlane.f32.xlu0 %v754_v63  ;;  %v755_v47 = vmul.f32 %v1404_v4, %v732_v0 }
 0x21c   :  { %v1096_v5 = vpop.eup %1095  ;;  %1101 = verf.f32 %v688_v1  ;;  %v958_v6 = vadd.f32 %v957_v49, %v956_v2  ;;  %v959_v56 = vpop.f32.mrb[18].mxu1 }
 0x21d   :  { %v960_v57 = vpop.f32.mrb[19].mxu1  ;;  %776 = vadd.xlane.f32.xlu1 %v755_v47  ;;  %v717_v61 = vadd.f32 1.0, %v1096_v5 }
 0x21e   :  { %v1098_v3 = vpop.eup %1097  ;;  %v641_v8 = vadd.f32 %v958_v6, %v1395_v42  ;;  %v961_v9 = vadd.f32 %v960_v57, %v959_v56 }
 0x21f   :  { %v733_v12 = vmul.f32 %v717_v61, %v669_v7  ;;  %v718_v51 = vadd.f32 1.0, %v1098_v3 }
 0x220   :  { %v689_v10 = vmul.f32 0.70710677, %v641_v8  ;;  %v644_v14 = vadd.f32 %v961_v9, %v1395_v42  ;;  %v673_v43 = vmul.f32 0.5, %v641_v8 }
 0x221   :  { %v756_v52 = vmul.f32 %v1404_v4, %v733_v12  ;;  %v734_v16 = vmul.f32 %v718_v51, %v670_v11 }
 0x222   :  { %1103 = verf.f32 %v689_v10  ;;  %v690_v17 = vmul.f32 0.70710677, %v644_v14  ;;  %v962_v18 = vpop.f32.mrb[20].mxu1  ;;  %v674_v53 = vmul.f32 0.5, %v644_v14 }
 0x223   :  { %v963_v22 = vpop.f32.mrb[21].mxu1  ;;  %778 = vadd.xlane.f32.xlu0 %v756_v52  ;;  %v757_v23 = vmul.f32 %v1404_v4, %v734_v16  ;;  %v909_v16 = vld [vmem:[#allocation2] ss:$0 sm:$0xff] }
 0x224   :  { %v1100_v24 = vpop.eup %1099  ;;  %1105 = verf.f32 %v690_v17  ;;  %v964_v26 = vadd.f32 %v963_v22, %v962_v18  ;;  %v965_v27 = vpop.f32.mrb[22].mxu1 }
 0x225   :  { %v966_v29 = vpop.f32.mrb[23].mxu1  ;;  %780 = vadd.xlane.f32.xlu1 %v757_v23  ;;  %v719_v30 = vadd.f32 1.0, %v1100_v24 }
 0x226   :  { %v1102_v31 = vpop.eup %1101  ;;  %v649_v15 = vadd.f32 %v964_v26, %v1395_v42  ;;  %v967_v33 = vadd.f32 %v966_v29, %v965_v27 }
 0x227   :  { %v735_v32 = vmul.f32 %v719_v30, %v671_v28  ;;  %v720_v34 = vadd.f32 1.0, %v1102_v31 }
 0x228   :  { %v691_v21 = vmul.f32 0.70710677, %v649_v15  ;;  %v652_v20 = vadd.f32 %v967_v33, %v1395_v42  ;;  %v675_v2 = vmul.f32 0.5, %v649_v15 }
 0x229   :  { %v758_v25 = vmul.f32 %v1404_v4, %v735_v32  ;;  %v736_v35 = vmul.f32 %v720_v34, %v672_v13 }
 0x22a   :  { %1107 = verf.f32 %v691_v21  ;;  %v692_v19 = vmul.f32 0.70710677, %v652_v20  ;;  %v968_v37 = vpop.f32.mrb[24].mxu1  ;;  %v676_v5 = vmul.f32 0.5, %v652_v20 }
 0x22b   :  { %v969_v39 = vpop.f32.mrb[25].mxu1  ;;  %782 = vadd.xlane.f32.xlu0 %v758_v25  ;;  %v759_v38 = vmul.f32 %v1404_v4, %v736_v35 }
 0x22c   :  { %v1104_v40 = vpop.eup %1103  ;;  %1109 = verf.f32 %v692_v19  ;;  %v970_v36 = vadd.f32 %v969_v39, %v968_v37  ;;  %v971_v41 = vpop.f32.mrb[26].mxu1 }
 0x22d   :  { %v972_v44 = vpop.f32.mrb[27].mxu1  ;;  %784 = vadd.xlane.f32.xlu1 %v759_v38  ;;  %v721_v45 = vadd.f32 1.0, %v1104_v40 }
 0x22e   :  { %v1106_v46 = vpop.eup %1105  ;;  %v657_v48 = vadd.f32 %v970_v36, %v1395_v42  ;;  %v973_v50 = vadd.f32 %v972_v44, %v971_v41 }
 0x22f   :  { %v737_v54 = vmul.f32 %v721_v45, %v673_v43  ;;  %v722_v55 = vadd.f32 1.0, %v1106_v46 }
 0x230   :  { %v693_v58 = vmul.f32 0.70710677, %v657_v48  ;;  %v660_v59 = vadd.f32 %v973_v50, %v1395_v42  ;;  %v677_v3 = vmul.f32 0.5, %v657_v48 }
 0x231   :  { %v760_v60 = vmul.f32 %v1404_v4, %v737_v54  ;;  %v738_v62 = vmul.f32 %v722_v55, %v674_v53 }
 0x232   :  { %1111 = verf.f32 %v693_v58  ;;  %v694_v63 = vmul.f32 0.70710677, %v660_v59  ;;  %v678_v11 = vmul.f32 0.5, %v660_v59 }
 0x233   :  { %786 = vadd.xlane.f32.xlu0 %v760_v60  ;;  %v761_v0 = vmul.f32 %v1404_v4, %v738_v62 }
 0x234   :  { %v1108_v1 = vpop.eup %1107  ;;  %1113 = verf.f32 %v694_v63 }
 0x235   :  { %788 = vadd.xlane.f32.xlu1 %v761_v0  ;;  %v723_v49 = vadd.f32 1.0, %v1108_v1 }
 0x236   :  { %v1110_v47 = vpop.eup %1109 }
 0x237   :  { %v739_v6 = vmul.f32 %v723_v49, %v675_v2  ;;  %v724_v56 = vadd.f32 1.0, %v1110_v47 }
 0x239   :  { %v762_v7 = vmul.f32 %v1404_v4, %v739_v6  ;;  %v740_v42 = vmul.f32 %v724_v56, %v676_v5 }
 0x23b   :  { %790 = vadd.xlane.f32.xlu0 %v762_v7  ;;  %v763_v57 = vmul.f32 %v1404_v4, %v740_v42 }
 0x23c   :  { %v1112_v61 = vpop.eup %1111 }
 0x23d   :  { %792 = vadd.xlane.f32.xlu1 %v763_v57  ;;  %v725_v8 = vadd.f32 1.0, %v1112_v61 }
 0x23e   :  { %v1114_v9 = vpop.eup %1113 }
 0x23f   :  { %v741_v12 = vmul.f32 %v725_v8, %v677_v3  ;;  %v726_v51 = vadd.f32 1.0, %v1114_v9 }
 0x241   :  { %v764_v10 = vmul.f32 %v1404_v4, %v741_v12  ;;  %v742_v14 = vmul.f32 %v726_v51, %v678_v11 }
 0x243   :  { %794 = vadd.xlane.f32.xlu0 %v764_v10  ;;  %v765_v52 = vmul.f32 %v1404_v4, %v742_v14 }
 0x245   :  { %796 = vadd.xlane.f32.xlu1 %v765_v52 }
 0x298   :  { %v767_v17 = vpop.xlane.xlu0 %766 }
 0x299   :  { %v805_v18 = vadd.f32 %v909_v16, %v767_v17 }
 0x29b   :  { %822 = vst.msk [vmem:[#allocation7] sm:$0xff] %vm821_vm1, %v805_v18 }
 0x29c   :  { %v769_v22 = vpop.xlane.xlu0 %768 }
 0x2a0   :  { %v771_v23 = vpop.xlane.xlu1 %770 }
 0x2a2   :  { %v855_v24 = vld [vmem:[#allocation7] sm:$0x3] }
 0x2a3   :  { %856 = vst [vmem:[%s1444_s7] sm:$0x3] %v855_v24 }
 0x2a4   :  { %v773_v26 = vpop.xlane.xlu1 %772 }
 0x2a8   :  { %v775_v27 = vpop.xlane.xlu0 %774 }
 0x2aa   :  { %v777_v28 = vpop.xlane.xlu1 %776 }
 0x2b0   :  { %v779_v29 = vpop.xlane.xlu0 %778 }
 0x2b2   :  { %v781_v30 = vpop.xlane.xlu1 %780 }
 0x2b8   :  { %v783_v31 = vpop.xlane.xlu0 %782 }
 0x2ba   :  { %v785_v4 = vpop.xlane.xlu1 %784 }
 0x2c0   :  { %v787_v15 = vpop.xlane.xlu0 %786 }
 0x2c2   :  { %v789_v33 = vpop.xlane.xlu1 %788 }
 0x2c8   :  { %v791_v13 = vpop.xlane.xlu0 %790 }
 0x2ca   :  { %v793_v32 = vpop.xlane.xlu1 %792 }
 0x2d0   :  { %v795_v34 = vpop.xlane.xlu0 %794 }
 0x2d2   :  { %v797_v21 = vpop.xlane.xlu1 %796 }
 0x2d3   :  { %873 = vsyncpa [#allocation4], 1 }
 0x2d4   :  { %874 = vsyncpa [#allocation6], 1 }

</bundles_post_ra>
